<compile_context>
chip_gen: v5e
topology: v5e:2x2
jax: 0.10.0
libtpu: 0.0.40
codegen_flags: <defaults>
</compile_context>

<pallas_src>
import jax
import jax.numpy as jnp
from jax.experimental import pallas as pl
from jax.experimental.pallas import tpu as pltpu

_LANE = 128
# Per-buffer tile target. Input + output are each double-buffered by the
# Pallas pipeline => ~4x this resident in VMEM.
_TARGET_TILE_BYTES = 2 * 1024 * 1024


def _hard_mish_kernel(x_ref, o_ref):
    x = x_ref[...]
    o_ref[...] = 0.5 * x * jnp.clip(x + 2.0, 0.0, 2.0)


def _pick_lane_width(n: int):
    """Largest lane-dense width (multiple of 128) that divides n exactly."""
    for w in (1024, 512, 256, 128):
        if n % w == 0:
            return w
    return None


def _hard_mish_2d(x2d):
    rows, width = x2d.shape
    itemsize = jnp.dtype(x2d.dtype).itemsize
    # Sublane alignment: 8 for 32-bit, 16 for 16-bit, 32 for 8-bit dtypes.
    sub = max(8, 32 // itemsize)

    target_rows = max(sub, (_TARGET_TILE_BYTES // (width * itemsize)) // sub * sub)
    if rows > target_rows:
        br = target_rows
    elif rows >= 2 * sub:
        # Split into (at least) 2 blocks so the 'parallel' axis can shard
        # across the two TensorCores of a v7x chip.
        br = (((rows + 1) // 2) + sub - 1) // sub * sub
    else:
        br = rows  # full-extent block (legal even when rows < sublane tile)

    grid = ((rows + br - 1) // br,)

    cost = pl.CostEstimate(
        flops=5 * rows * width,
        transcendentals=0,
        bytes_accessed=2 * rows * width * itemsize,
    )

    return pl.pallas_call(
        _hard_mish_kernel,
        out_shape=jax.ShapeDtypeStruct((rows, width), x2d.dtype),
        grid_spec=pltpu.PrefetchScalarGridSpec(
            num_scalar_prefetch=0,
            grid=grid,
            in_specs=[pl.BlockSpec((br, width), lambda i: (i, 0))],
            out_specs=pl.BlockSpec((br, width), lambda i: (i, 0)),
        ),
        compiler_params=pltpu.CompilerParams(
            dimension_semantics=("parallel",),
        ),
        cost_estimate=cost,
    )(x2d)


def hard_mish(x):
    """Elementwise Hard Mish via Pallas. Accepts any shape / float dtype."""
    orig_shape = x.shape
    n = x.size
    if n == 0:
        return x

    w = _pick_lane_width(n)
    if w is not None:
        # Common case (e.g. NCHW conv activations): lane-dense reshape only,
        # no pad / slice HBM copies.
        return _hard_mish_2d(x.reshape(n // w, w)).reshape(orig_shape)

    # Rare fallback: flat length not a multiple of 128 -> pad, compute, slice.
    n_pad = ((n + _LANE - 1) // _LANE) * _LANE
    flat = jnp.pad(x.reshape(-1), (0, n_pad - n))
    y2d = _hard_mish_2d(flat.reshape(n_pad // _LANE, _LANE))
    return y2d.reshape(-1)[:n].reshape(orig_shape)


if __name__ == "__main__":
    key = jax.random.PRNGKey(0)
    k0, k1 = jax.random.split(key)

    # NCHW input, matching typical PyTorch conv activations (aligned path).
    x = jax.random.normal(k0, (2, 4, 16, 16), dtype=jnp.float32)
    y = jax.block_until_ready(hard_mish(x))
    y_ref = 0.5 * x * jnp.clip(x + 2.0, 0.0, 2.0)
    assert y.shape == x.shape and y.dtype == x.dtype
    assert jnp.allclose(y, y_ref, atol=1e-6), "mismatch vs reference (aligned path)"

    # Ragged shape exercising the pad/slice fallback path.
    x2 = jax.random.normal(k1, (3, 5, 7), dtype=jnp.float32)
    y2 = jax.block_until_ready(hard_mish(x2))
    y2_ref = 0.5 * x2 * jnp.clip(x2 + 2.0, 0.0, 2.0)
    assert y2.shape == x2.shape and y2.dtype == x2.dtype
    assert jnp.allclose(y2, y2_ref, atol=1e-6), "mismatch vs reference (fallback path)"

    print("KERNEL_OK")
</pallas_src>

<mosaic_0001>
module attributes {stable_mosaic.version = 11 : i64} {
  func.func @_hard_mish_kernel(%arg0: i32, %arg1: memref<2x1024xf32, #tpu.memory_space<vmem>>, %arg2: memref<2x1024xf32, #tpu.memory_space<vmem>>) attributes {dimension_semantics = [#tpu.dimension_semantics<parallel>], iteration_bounds = array<i64: 1>, scalar_prefetch = 0 : i64, scratch_operands = 0 : i64, tpu.core_type = #tpu.core_type<tc>, window_params = [{transform_indices = @transform_0, window_bounds = array<i64: 2, 1024>}, {transform_indices = @transform_1, window_bounds = array<i64: 2, 1024>}]} {
    %c0 = arith.constant 0 : index
    %c0_0 = arith.constant 0 : index
    %0 = vector.load %arg1[%c0, %c0_0] : memref<2x1024xf32, #tpu.memory_space<vmem>>, vector<2x1024xf32>
    %cst = arith.constant 5.000000e-01 : f32
    %1 = vector.broadcast %cst : f32 to vector<2x1024xf32>
    %2 = arith.mulf %1, %0 : vector<2x1024xf32>
    %cst_1 = arith.constant 2.000000e+00 : f32
    %3 = vector.broadcast %cst_1 : f32 to vector<2x1024xf32>
    %4 = arith.addf %0, %3 : vector<2x1024xf32>
    %cst_2 = arith.constant 0.000000e+00 : f32
    %cst_3 = arith.constant 2.000000e+00 : f32
    %5 = vector.broadcast %cst_2 : f32 to vector<2x1024xf32>
    %6 = arith.maximumf %5, %4 : vector<2x1024xf32>
    %7 = vector.broadcast %cst_3 : f32 to vector<2x1024xf32>
    %8 = arith.minimumf %7, %6 : vector<2x1024xf32>
    %9 = arith.mulf %2, %8 : vector<2x1024xf32>
    %c0_4 = arith.constant 0 : index
    %c0_5 = arith.constant 0 : index
    %10 = vector.load %arg2[%c0_4, %c0_5] : memref<2x1024xf32, #tpu.memory_space<vmem>>, vector<2x1024xf32>
    tpu.vector_store %arg2[%c0_4, %c0_5], %9 {strides = array<i32>} : memref<2x1024xf32, #tpu.memory_space<vmem>>, vector<2x1024xf32>,
    return
  }
  func.func @transform_0(%arg0: i32) -> (i32, i32) {
    %c0_i32 = arith.constant 0 : i32
    %c0_i32_0 = arith.constant 0 : i32
    return %arg0, %c0_i32 : i32, i32
  }
  func.func @transform_1(%arg0: i32) -> (i32, i32) {
    %c0_i32 = arith.constant 0 : i32
    %c0_i32_0 = arith.constant 0 : i32
    return %arg0, %c0_i32 : i32, i32
  }
}

</mosaic_0001>

<bundles_post_ra>
// kernel: tpu_custom_call.1
= control target key start
LH: loop header
LB: loop body
LE: loop exit
PB: predicated region body
PF: predicated region fallthrough
CT: control target
= control target key end

     0   :  { %6 = vsyncpa [#allocation3], 0  ;;  %s126_s0 = inlined_call_operand.hbm [shape: f32[2,1024], index: 0, kind: input, shape index: {}]   ;;  %s127_s1 = inlined_call_operand.hbm [shape: f32[2,1024], index: 1, kind: output, shape index: {}]  }
   0x1   :  { %7 = vsyncpa [#allocation4], 0  ;;  %s13_s8 = sshll.u32 %s126_s0, 4  ;;  %s108_s9 = smov [#allocation2]   ;;  %s14_s8 = int_to_ptr.hbm [resolvable:$true] %s13_s8 }
   0x2   :  { %s15_s10 = sshll.u32 %s108_s9, 4  ;;  %s16_s10 = int_to_ptr.vmem [resolvable:$true] %s15_s10 }
   0x3   :  { %18 = dma.hbm_to_vmem [thread:$0]  %s14_s8, 256, %s16_s10, [#allocation3]  }
   0x4   :  { %104 = dma.done.wait [#allocation3], 256  }
   0x5   :  { %105 = vsyncadd [#allocation3], 4294967040  ;;  %v23_v0 = vld [vmem:[#allocation2] sm:$0xff]  ;;  %v24_v1 = vld [vmem:[#allocation2 + $0x8] sm:$0xff]  ;;  %s109_s11 = smov [#allocation5]   ;;  %s44_s14 = sshll.u32 %s127_s1, 4  ;;  %s45_s14 = int_to_ptr.hbm [resolvable:$true] %s44_s14 }
   0x6   :  { %v27_v2 = vadd.f32 2.0, %v23_v0  ;;  %v28_v3 = vadd.f32 2.0, %v24_v1  ;;  %v25_v4 = vmul.f32 0.5, %v23_v0  ;;  %v26_v6 = vmul.f32 0.5, %v24_v1  ;;  %s42_s12 = sshll.u32 %s109_s11, 4  ;;  %s43_s12 = int_to_ptr.vmem [resolvable:$true] %s42_s12 }
   0x8   :  { %v29_v5 = vmax.f32 %v27_v2, 0.0  ;;  %v30_v7 = vmax.f32 %v28_v3, 0.0 }
   0xa   :  { %v31_v8 = vmin.f32 %v29_v5, 2.0  ;;  %v32_v9 = vmin.f32 %v30_v7, 2.0 }
   0xc   :  { %v33_v10 = vmul.f32 %v31_v8, %v25_v4  ;;  %v34_v11 = vmul.f32 %v32_v9, %v26_v6 }
   0xe   :  { %35 = vst [vmem:[#allocation5] sm:$0xff] %v33_v10 }
   0xf   :  { %36 = vst [vmem:[#allocation5 + $0x8] sm:$0xff] %v34_v11 }
  0x10   :  { %47 = dma.vmem_to_hbm [thread:$0]  %s43_s12, 256, %s45_s14, [#allocation4]  }
  0x11   :  { %106 = dma.done.wait [#allocation4], 256  }
  0x12   :  { %107 = vsyncadd [#allocation4], 4294967040 }
  0x13   :  { %52 = vsyncpa [#allocation3], 1 }
  0x14   :  { %53 = vsyncpa [#allocation4], 1 }

</bundles_post_ra>
